<compile_context>
chip_gen: v7x
topology: tpu7x:2x2x1
jax: 0.10.0
libtpu: 0.0.40
codegen_flags: <defaults>
</compile_context>

<pallas_src>
import math

import jax
import jax.numpy as jnp
from jax.experimental import pallas as pl
from jax.experimental.pallas import tpu as pltpu


def make_pe_table(d_model: int, max_len: int = 5000) -> jnp.ndarray:
    """Deterministic PE buffer, same math as the PyTorch __init__.

    Returns shape (max_len, 1, d_model), float32 (the registered buffer).
    """
    assert d_model % 2 == 0, "PositionalEncoding requires an even d_model"
    position = jnp.arange(0, max_len, dtype=jnp.float32)[:, None]             # (max_len, 1)
    div_term = jnp.exp(
        jnp.arange(0, d_model, 2, dtype=jnp.float32) * (-math.log(10000.0) / d_model)
    )                                                                          # (d_model/2,)
    angles = position * div_term                                               # (max_len, d_model/2)
    pe = jnp.zeros((max_len, d_model), dtype=jnp.float32)
    pe = pe.at[:, 0::2].set(jnp.sin(angles))
    pe = pe.at[:, 1::2].set(jnp.cos(angles))
    return pe[:, None, :]                                                      # (max_len, 1, d_model)


def _add_pe_kernel(x_ref, pe_ref, o_ref):
    # x_ref/o_ref: (tile_s, tile_c) lane-dense blocks of the folded (S, B*D) view.
    # pe_ref:      (tile_s, D) f32 block, batch-independent.
    pe = pe_ref[...]                                    # f32
    rep = x_ref.shape[-1] // pe_ref.shape[-1]           # = batch replication factor (static)
    if rep > 1:
        pe = jnp.tile(pe, (1, rep))                     # lane-tile to (tile_s, tile_c); hides under DMA
    o_ref[...] = (x_ref[...].astype(jnp.float32) + pe).astype(o_ref.dtype)


def _round_up(x: int, m: int) -> int:
    return ((x + m - 1) // m) * m


_PER_BLOCK_BUDGET = 4 * 1024 * 1024   # bytes per x/out block; safe on v5e/v6e/v7x


def _choose_tiles(seq_len: int, width: int, d_model: int, itemsize: int):
    """Pick (tile_s, tile_c) for the folded (S, B*D) layout, or None → fall back.

    tile_c is always a multiple of d_model so the in-kernel PE replication is a
    simple whole-block tile.  Returns None if no clean lane-dense tiling exists.
    """
    sub = max(8, 32 // itemsize)        # dtype-aware sublane multiple (8/16/32)

    # Column tile: full width if `sub` rows of it fit the budget; otherwise a
    # multiple of d_model (requires d_model % 128 == 0 for lane-dense blocks).
    if sub * width * itemsize <= _PER_BLOCK_BUDGET:
        tile_c = width
    elif d_model % 128 == 0:
        d_per = max(1, _PER_BLOCK_BUDGET // (sub * d_model * itemsize))
        tile_c = d_per * d_model
    else:
        return None

    # Row tile: as many rows (multiple of `sub`) as fit the budget, but keep
    # >= 4 sequence steps when S allows (v7x megacore + per-TC double-buffering).
    budget_rows = max(sub, (_PER_BLOCK_BUDGET // (tile_c * itemsize)) // sub * sub)
    if seq_len >= 4 * sub:
        step_cap = max(sub, (seq_len // 4) // sub * sub)
    else:
        step_cap = _round_up(seq_len, sub)
    tile_s = min(budget_rows, step_cap, 1024)
    if tile_s >= seq_len:
        tile_s = seq_len                 # full extent is always a legal block dim
    return tile_s, tile_c


def positional_encoding_forward(x: jnp.ndarray, pe: jnp.ndarray) -> jnp.ndarray:
    """x: (S, B, D); pe: (max_len, 1, D) float32 buffer from make_pe_table().

    Returns x + PE[:S] with the module's broadcast-over-batch semantics.
    NOTE: the result is a fresh buffer; pass donate_argnums at the jit level if
    x's buffer should be reused (no in-kernel aliasing is requested here).
    """
    S, B, D = x.shape
    max_len = pe.shape[0]
    assert pe.shape == (max_len, 1, D), "PE buffer shape mismatch"
    assert S <= max_len, "sequence length exceeds max_len of the PE buffer"

    width = B * D
    itemsize = x.dtype.itemsize
    tiles = _choose_tiles(S, width, D, itemsize) if (width % 128 == 0) else None
    if tiles is None:
        # Tiny / non-128-multiple widths: fused XLA add beats any kernel launch
        # and avoids masked partial stores.
        return (x + pe[:S]).astype(x.dtype)
    tile_s, tile_c = tiles

    # Slice PE to exactly S rows so PE and x share the same row extent and the
    # same ragged-edge masking (robust by construction, tiny HBM footprint).
    pe2 = pe.reshape(max_len, D)[:S]            # (S, D) f32
    x2 = x.reshape(S, width)                    # lane-dense contiguous fold (free)

    grid = (pl.cdiv(S, tile_s), pl.cdiv(width, tile_c))

    # VMEM actually needed: x-in + out + pe, each double-buffered, plus headroom.
    x_blk = tile_s * tile_c * itemsize
    pe_blk = tile_s * D * 4
    vmem_need = 2 * (2 * x_blk + pe_blk) + (2 << 20)
    if vmem_need > (60 << 20):                  # keep headroom under v7x's 64 MiB/TC
        return (x + pe[:S]).astype(x.dtype)
    vmem_limit = int(min(max(vmem_need, 16 << 20), 60 << 20))

    out2 = pl.pallas_call(
        _add_pe_kernel,
        out_shape=jax.ShapeDtypeStruct((S, width), x2.dtype),
        grid=grid,
        in_specs=[
            pl.BlockSpec((tile_s, tile_c), lambda i, j: (i, j)),   # x block
            pl.BlockSpec((tile_s, D), lambda i, j: (i, 0)),        # PE block (batch-independent,
                                                                   #  re-fetched only when i changes)
        ],
        out_specs=pl.BlockSpec((tile_s, tile_c), lambda i, j: (i, j)),
        compiler_params=pltpu.CompilerParams(
            dimension_semantics=("parallel", "parallel"),
            vmem_limit_bytes=vmem_limit,
        ),
    )(x2, pe2)
    return out2.reshape(S, B, D)


if __name__ == "__main__":
    # Small shapes consistent with the module.  d_model=64 with batch=2 makes
    # B*D = 128, so the lane-dense Pallas path is actually exercised.
    seq_len, batch, d_model = 8, 2, 64
    max_len = 64  # small max_len for the synthetic buffer

    key = jax.random.PRNGKey(0)
    x = jax.random.normal(key, (seq_len, batch, d_model), dtype=jnp.float32)

    pe = make_pe_table(d_model, max_len)        # module buffer (max_len, 1, D)

    # Pure-JAX reference of the forward semantics.
    ref = x + pe[:seq_len]

    out = positional_encoding_forward(x, pe)
    out = jax.block_until_ready(out)

    assert out.shape == x.shape and out.dtype == x.dtype
    assert jnp.allclose(out, ref, atol=1e-6), "mismatch vs reference (kernel path)"

    # Also check the guarded fallback path (B*D = 64 < 128 → fused XLA add).
    x_small = jax.random.normal(jax.random.PRNGKey(0), (seq_len, batch, 32), dtype=jnp.float32)
    pe_small = make_pe_table(32, max_len)
    out_small = jax.block_until_ready(positional_encoding_forward(x_small, pe_small))
    assert jnp.allclose(out_small, x_small + pe_small[:seq_len], atol=1e-6), "mismatch (fallback path)"

    print("KERNEL_OK")
</pallas_src>

<mosaic_0001>
module attributes {stable_mosaic.version = 11 : i64} {
  func.func @_add_pe_kernel(%arg0: i32, %arg1: i32, %arg2: memref<8x128xf32, #tpu.memory_space<vmem>>, %arg3: memref<8x64xf32, #tpu.memory_space<vmem>>, %arg4: memref<8x128xf32, #tpu.memory_space<vmem>>) attributes {dimension_semantics = [#tpu.dimension_semantics<parallel>, #tpu.dimension_semantics<parallel>], iteration_bounds = array<i64: 1, 1>, scalar_prefetch = 0 : i64, scratch_operands = 0 : i64, tpu.core_type = #tpu.core_type<tc>, window_params = [{transform_indices = @transform_0, window_bounds = array<i64: 8, 128>}, {transform_indices = @transform_1, window_bounds = array<i64: 8, 64>}, {transform_indices = @transform_2, window_bounds = array<i64: 8, 128>}]} {
    %c0 = arith.constant 0 : index
    %c0_0 = arith.constant 0 : index
    %0 = vector.load %arg3[%c0, %c0_0] : memref<8x64xf32, #tpu.memory_space<vmem>>, vector<8x64xf32>
    %1 = tpu.concatenate %0, %0 in 1 : vector<8x64xf32>, vector<8x64xf32> -> vector<8x128xf32>
    %c0_1 = arith.constant 0 : index
    %c0_2 = arith.constant 0 : index
    %2 = vector.load %arg2[%c0_1, %c0_2] : memref<8x128xf32, #tpu.memory_space<vmem>>, vector<8x128xf32>
    %3 = arith.addf %2, %1 : vector<8x128xf32>
    %c0_3 = arith.constant 0 : index
    %c0_4 = arith.constant 0 : index
    %4 = vector.load %arg4[%c0_3, %c0_4] : memref<8x128xf32, #tpu.memory_space<vmem>>, vector<8x128xf32>
    tpu.vector_store %arg4[%c0_3, %c0_4], %3 {strides = array<i32>} : memref<8x128xf32, #tpu.memory_space<vmem>>, vector<8x128xf32>,
    return
  }
  func.func @transform_0(%arg0: i32, %arg1: i32) -> (i32, i32) {
    %c0_i32 = arith.constant 0 : i32
    return %arg0, %arg1 : i32, i32
  }
  func.func @transform_1(%arg0: i32, %arg1: i32) -> (i32, i32) {
    %c0_i32 = arith.constant 0 : i32
    %c0_i32_0 = arith.constant 0 : i32
    return %arg0, %c0_i32 : i32, i32
  }
  func.func @transform_2(%arg0: i32, %arg1: i32) -> (i32, i32) {
    %c0_i32 = arith.constant 0 : i32
    return %arg0, %arg1 : i32, i32
  }
}

</mosaic_0001>

<bundles_post_ra>
// kernel: tpu_custom_call.1
= control target key start
LH: loop header
LB: loop body
LE: loop exit
PB: predicated region body
PF: predicated region fallthrough
CT: control target
= control target key end

     0   :  { %7 = vsyncpa [#allocation3], 0  ;;  %s193_s0 = inlined_call_operand.hbm [shape: f32[8,128], index: 0, kind: input, shape index: {}]   ;;  %s194_s1 = inlined_call_operand.hbm [shape: f32[8,64], index: 1, kind: input, shape index: {}]   ;;  %s195_s2 = inlined_call_operand.hbm [shape: f32[8,128], index: 2, kind: output, shape index: {}]  }
   0x1   :  { %8 = vsyncpa [#allocation6], 0 }
   0x2   :  { %9 = vsyncpa [#allocation4], 0  ;;  %s138_s9 = smov [#allocation2]   ;;  %s139_s11 = smov [#allocation5]  }
   0x3   :  { %s16_s10 = sshll.u32 %s138_s9, 4  ;;  %s26_s12 = sshll.u32 %s139_s11, 4  ;;  %s17_s10 = int_to_ptr.vmem [resolvable:$true] %s16_s10  ;;  %s27_s12 = int_to_ptr.vmem [resolvable:$true] %s26_s12 }
   0x4   :  { %s66_s15 = scalar_lea.hbm %s193_s0, 128 }
   0x5   :  { %p67_p0 = scmp.ne.s32.totalorder %s193_s0, %s66_s15  ;;  %p70_p1 = scmp.lt.u32.totalorder %s66_s15, %s193_s0 }
   0x7   :  { %p72_p2 = pnand %p70_p1, %p67_p0 }
   0x9   :  { %75 = shalt.err (!%p72_p2)
}
   0xa   :  { %s76_s20 = scalar_lea.vmem %s17_s10, 128  ;;  %p81_p4 = scmp.lt.s32.totalorder %s17_s10, %s17_s10 }
   0xb   :  { %p77_p3 = scmp.ne.s32.totalorder %s17_s10, %s76_s20  ;;  %p82_p5 = scmp.lt.s32.totalorder %s76_s20, %s76_s20 }
   0xd   :  { %p83_p6 = por %p82_p5, %p81_p4 }
   0xf   :  { %p84_p7 = pnand %p83_p6, %p77_p3 }
  0x11   :  { %87 = shalt.err (!%p84_p7)
}
  0x12   :  { %19 = dma.hbm_to_vmem [thread:$0]  %s193_s0, 128, %s17_s10, [#allocation3]  }
  0x13   :  { %s88_s25 = scalar_lea.hbm %s194_s1, 128 }
  0x14   :  { %p89_p8 = scmp.ne.s32.totalorder %s194_s1, %s88_s25  ;;  %p92_p9 = scmp.lt.u32.totalorder %s88_s25, %s194_s1 }
  0x16   :  { %p94_p10 = pnand %p92_p9, %p89_p8 }
  0x18   :  { %97 = shalt.err (!%p94_p10)
}
  0x19   :  { %s98_s30 = scalar_lea.vmem %s27_s12, 128  ;;  %p103_p12 = scmp.lt.s32.totalorder %s27_s12, %s27_s12 }
  0x1a   :  { %p99_p11 = scmp.ne.s32.totalorder %s27_s12, %s98_s30  ;;  %p104_p13 = scmp.lt.s32.totalorder %s98_s30, %s98_s30 }
  0x1c   :  { %p105_p0 = por %p104_p13, %p103_p12 }
  0x1e   :  { %p106_p1 = pnand %p105_p0, %p99_p11 }
  0x20   :  { %109 = shalt.err (!%p106_p1)
}
  0x21   :  { %29 = dma.hbm_to_vmem [thread:$0]  %s194_s1, 128, %s27_s12, [#allocation6]  }
  0x22   :  { %132 = dma.done.wait [#allocation3], 128  }
  0x23   :  { %133 = vsyncadd [#allocation3], 4294967168 }
  0x24   :  { %134 = dma.done.wait [#allocation6], 128  }
  0x25   :  { %135 = vsyncadd [#allocation6], 4294967168  ;;  %v36_v0 = vld [vmem:[#allocation5] sm:$0xff]  ;;  %s140_s4 = smov 64   ;;  %vm41_vm0 = vcmask 523264   ;;  %v43_v1 = vld [vmem:[#allocation2] sm:$0xff] }
  0x26   :  { %38 = vrot.lane.b32.xlu0 %v36_v0, %s140_s4  ;;  %s141_s5 = smov [#allocation7]  }
  0x27   :  { %s52_s6 = sshll.u32 %s141_s5, 4  ;;  %s53_s6 = int_to_ptr.vmem [resolvable:$true] %s52_s6 }
  0x28   :  { %s110_s7 = scalar_lea.vmem %s53_s6, 128  ;;  %p115_p3 = scmp.lt.s32.totalorder %s53_s6, %s53_s6 }
  0x29   :  { %p111_p2 = scmp.ne.s32.totalorder %s53_s6, %s110_s7  ;;  %p116_p4 = scmp.lt.s32.totalorder %s110_s7, %s110_s7 }
  0x2b   :  { %p117_p5 = por %p116_p4, %p115_p3 }
  0x2d   :  { %p118_p6 = pnand %p117_p5, %p111_p2 }
  0x98   :  { %v39_v2 = vpop.permute.xlu0 %38 }
  0x99   :  { %v42_v3 = vsel %vm41_vm0, %v36_v0, %v39_v2 }
  0x9a   :  { %v44_v4 = vadd.f32 %v43_v1, %v42_v3 }
  0x9c   :  { %45 = vst [vmem:[#allocation7] sm:$0xff] %v44_v4 }
  0x9d   :  { %121 = shalt.err (!%p118_p6)
}
  0x9e   :  { %s122_s9 = scalar_lea.hbm %s195_s2, 128 }
  0x9f   :  { %p123_p7 = scmp.ne.s32.totalorder %s195_s2, %s122_s9  ;;  %p126_p8 = scmp.lt.u32.totalorder %s122_s9, %s195_s2 }
  0xa1   :  { %p128_p9 = pnand %p126_p8, %p123_p7 }
  0xa3   :  { %131 = shalt.err (!%p128_p9)
}
  0xa4   :  { %55 = dma.vmem_to_hbm [thread:$0]  %s53_s6, 128, %s195_s2, [#allocation4]  }
  0xa5   :  { %136 = dma.done.wait [#allocation4], 128  }
  0xa6   :  { %137 = vsyncadd [#allocation4], 4294967168 }
  0xa7   :  { %59 = vsyncpa [#allocation3], 1 }
  0xa8   :  { %60 = vsyncpa [#allocation6], 1 }
  0xa9   :  { %61 = vsyncpa [#allocation4], 1 }

</bundles_post_ra>
